<compile_context>
chip_gen: v6e
topology: v6e:2x2x1
jax: 0.10.0
libtpu: 0.0.40
codegen_flags: <defaults>
</compile_context>

<pallas_src>
import numpy as np
import jax
import jax.numpy as jnp
from jax.experimental import pallas as pl
from jax.experimental.pallas import tpu as pltpu

B = 256          # demo batch (exercises a 2-block "parallel" grid)
F = 8            # n_fields
NFEAT = 64       # n_features
D = 16           # dim_embed
DIM_DEEP = [100, 60, 20]
HP = 128         # padded hidden width (lane-dense)


def deepfm_kernel(e_ref, c_ref, fw_ref, b1_ref, w2_ref, b2_ref, w3_ref, b3_ref,
                  w4_ref, scal_ref, out_ref):
    e_bf = e_ref[...]                                   # (tb, F*D) bf16

    # Fused [pool | W1] matmul: columns [:HP] = FM field-sums s,
    # columns [HP:] = first deep-layer pre-activation (BN folded).
    t = jnp.dot(e_bf, fw_ref[...], preferred_element_type=jnp.float32)   # (tb, 2*HP)
    s = t[:, :HP]

    h = jnp.maximum(t[:, HP:] + b1_ref[...], 0.0)
    h = jnp.dot(h.astype(jnp.bfloat16), w2_ref[...],
                preferred_element_type=jnp.float32) + b2_ref[...]
    h = jnp.maximum(h, 0.0)
    h = jnp.dot(h.astype(jnp.bfloat16), w3_ref[...],
                preferred_element_type=jnp.float32) + b3_ref[...]
    h = jnp.maximum(h, 0.0)

    # Per-row scalar = 0.5*lin_w*||s||^2 + h3 . w4.  Reduce over lanes via a
    # small MXU matmul (contract both operands' last dims) so the result comes
    # out in row (lane-dense) layout; add the precombined constant and squash.
    comb = s * s * scal_ref[0] + h * w4_ref[...]        # (tb, HP) f32
    ones8 = jnp.ones((8, HP), jnp.float32)
    red = jax.lax.dot_general(ones8, comb, (((1,), (1,)), ((), ())),
                              preferred_element_type=jnp.float32)   # (8, tb)
    out_ref[...] = jax.nn.sigmoid(red[0:1, :] + c_ref[...])         # (1, tb)


def _pick_block_rows(batch):
    # Lane-dense (1, tb) row blocks need tb % 128 == 0 (or tb == batch).
    # Prefer >= 2 grid blocks so the "parallel" batch axis can shard across
    # v7x's two TensorCores; cap at 2048 rows (VMEM-safe on every generation).
    for tb in (2048, 1024, 512, 256, 128):
        if batch % tb == 0 and batch // tb >= 2:
            return tb
    for tb in (2048, 1024, 512, 256, 128):
        if batch % tb == 0:
            return tb
    return batch          # tiny / odd batch: single whole-batch block


def _make_pool(kdim, dim):
    """FM field-pooling one-hot: pool[f*dim + d, d] = 1 (host constant)."""
    pool = np.zeros((kdim, HP), np.float32)
    pool[np.arange(kdim), np.arange(kdim) % dim] = 1.0
    return jnp.asarray(pool, dtype=jnp.bfloat16)


def _fold_bn_and_pad(params):
    """Fold eval-mode BN into linear weights, zero-pad hidden dims to HP."""
    eps = 1e-5
    ws, bs = [], []
    for i in range(3):
        gamma, beta, rm, rv = params["bn"][i]
        s = gamma / jnp.sqrt(rv + eps)
        t = beta - rm * s
        w = params["deep_w"][i] * s[None, :]
        b = params["deep_b"][i] * s + t
        row_pad = 0 if i == 0 else HP - w.shape[0]
        w = jnp.pad(w, ((0, row_pad), (0, HP - w.shape[1])))
        b = jnp.pad(b, (0, HP - b.shape[0])).reshape(1, HP)
        ws.append(w.astype(jnp.bfloat16))
        bs.append(b.astype(jnp.float32))
    w4_row = jnp.pad(params["deep_w"][3][:, 0],
                     (0, HP - params["deep_w"][3].shape[0]))
    w4_row = w4_row.reshape(1, HP).astype(jnp.float32)
    return ws, bs, w4_row


def deepfm_forward(X1, X2, params, block_rows=None):
    batch, nf = X1.shape
    dim = params["embed_table"].shape[1]
    kdim = nf * dim
    x2 = X2.astype(jnp.float32)

    # Embedding gathers (glue, plain JAX) + lane-dense flatten.
    embed = params["embed_table"][X1] * x2[:, :, None]            # (B, F, D) f32
    e_f32 = embed.reshape(batch, kdim)
    e_flat = e_f32.astype(jnp.bfloat16)                           # (B, F*D) bf16

    # Per-row constant c (lane-dense row): first-order term, lin_b, b4 and the
    # -0.5*lin_w*||e||^2 half of the FM term, folded wrapper-side from f32.
    w_sum = jnp.sum(params["w_table"][X1][..., 0] * x2, axis=1)   # (B,)
    e_sq = jnp.sum(e_f32 * e_f32, axis=1)                         # (B,)  ||e||^2
    lin_w = params["lin_w"][0, 0]
    lin_b = params["lin_b"][0, 0]
    b4 = params["deep_b"][3][0]
    c = lin_w * w_sum + lin_b + b4 - 0.5 * lin_w * e_sq
    c = c.reshape(1, batch).astype(jnp.float32)                   # (1, B)

    ws, bs, w4_row = _fold_bn_and_pad(params)
    fused_w1 = jnp.concatenate([_make_pool(kdim, dim), ws[0]], axis=1)  # (kdim, 2*HP)
    half_lin = jnp.reshape(0.5 * lin_w, (1,)).astype(jnp.float32)       # SMEM scalar

    if block_rows is None:
        tb = _pick_block_rows(batch)
    else:
        tb = block_rows
        assert batch % tb == 0, "batch must be divisible by block_rows"
        assert tb % 128 == 0 or tb == batch, (
            "lane-dense row blocks need block_rows % 128 == 0 (or == batch)")
    grid = (batch // tb,)

    def const(shape):
        return pl.BlockSpec(shape, lambda i: (0, 0))   # VMEM-resident weights

    in_specs = [
        pl.BlockSpec((tb, kdim), lambda i: (i, 0)),    # e_flat (pipelined)
        pl.BlockSpec((1, tb), lambda i: (0, i)),       # c      (pipelined, lane-dense)
        const((kdim, 2 * HP)),                         # fused [pool | W1]
        const((1, HP)),                                # b1
        const((HP, HP)), const((1, HP)),               # W2, b2
        const((HP, HP)), const((1, HP)),               # W3, b3
        const((1, HP)),                                # w4 row
        pl.BlockSpec(memory_space=pltpu.MemorySpace.SMEM),   # [0.5*lin_w]
    ]

    out_row = pl.pallas_call(
        deepfm_kernel,
        out_shape=jax.ShapeDtypeStruct((1, batch), jnp.float32),
        grid=grid,
        in_specs=in_specs,
        out_specs=pl.BlockSpec((1, tb), lambda i: (0, i)),
        compiler_params=pltpu.CompilerParams(
            dimension_semantics=("parallel",),
            vmem_limit_bytes=48 * 1024 * 1024),
    )(e_flat, c, fused_w1, bs[0], ws[1], bs[1], ws[2], bs[2], w4_row, half_lin)

    return out_row.reshape(batch, 1)


def deepfm_ref(X1, X2, params):
    """Pure-JAX f32 reference (eval-mode semantics of the PyTorch forward)."""
    embed = params["embed_table"][X1] * X2[:, :, None]
    fm = 0.5 * jnp.sum(jnp.sum(embed, 1) ** 2 - jnp.sum(embed ** 2, 1),
                       axis=1, keepdims=True)
    w = jnp.sum(params["w_table"][X1][..., 0] * X2, axis=1, keepdims=True)
    lin = (w + fm) * params["lin_w"][0, 0] + params["lin_b"][0, 0]
    h = embed.reshape(X1.shape[0], -1)
    eps = 1e-5
    for i in range(3):
        gamma, beta, rm, rv = params["bn"][i]
        h = h @ params["deep_w"][i] + params["deep_b"][i]
        h = (h - rm) / jnp.sqrt(rv + eps) * gamma + beta
        h = jnp.maximum(h, 0.0)
    deep = h @ params["deep_w"][3] + params["deep_b"][3]
    return jax.nn.sigmoid(lin + deep)


def init_params(key):
    ks = jax.random.split(key, 12)
    dims = [F * D] + DIM_DEEP
    params = {
        "embed_table": jax.random.normal(ks[0], (NFEAT, D), jnp.float32) * 0.1,
        "w_table": jax.random.normal(ks[1], (NFEAT, 1), jnp.float32) * 0.1,
        "lin_w": jnp.full((1, 1), 0.7, jnp.float32),
        "lin_b": jnp.full((1, 1), 0.1, jnp.float32),
    }
    deep_w, deep_b, bn = [], [], []
    for i in range(3):
        fan_in = dims[i]
        deep_w.append(jax.random.normal(ks[2 + i], (dims[i], dims[i + 1]),
                                        jnp.float32) / jnp.sqrt(fan_in))
        deep_b.append(jax.random.normal(ks[5 + i], (dims[i + 1],),
                                        jnp.float32) * 0.01)
        n = dims[i + 1]
        gamma = 1.0 + 0.05 * jnp.arange(n, dtype=jnp.float32) / n
        beta = 0.01 * jnp.arange(n, dtype=jnp.float32) / n
        rm = jnp.zeros((n,), jnp.float32)
        rv = jnp.ones((n,), jnp.float32)
        bn.append((gamma, beta, rm, rv))
    deep_w.append(jax.random.normal(ks[8], (dims[-1], 1), jnp.float32)
                  / jnp.sqrt(dims[-1]))
    deep_b.append(jax.random.normal(ks[9], (1,), jnp.float32) * 0.01)
    params["deep_w"] = deep_w
    params["deep_b"] = deep_b
    params["bn"] = bn
    return params


if __name__ == "__main__":
    key = jax.random.PRNGKey(0)
    kp, k1, k2 = jax.random.split(key, 3)
    params = init_params(kp)
    X1 = jax.random.randint(k1, (B, F), 0, NFEAT, dtype=jnp.int32)
    X2 = jax.random.uniform(k2, (B, F), dtype=jnp.float32)

    # Auto block_rows -> tb=128, grid of 2 "parallel" batch blocks.
    fwd = jax.jit(lambda x1, x2: deepfm_forward(x1, x2, params))
    out = jax.block_until_ready(fwd(X1, X2))

    ref = deepfm_ref(X1, X2, params)
    assert out.shape == (B, 1)
    # bf16 MXU operands -> tolerance loosened from 1e-5
    assert jnp.allclose(out, ref, atol=1e-2, rtol=1e-2), (
        float(jnp.max(jnp.abs(out - ref))))
    print("KERNEL_OK")
</pallas_src>

<mosaic_0001>
module attributes {stable_mosaic.version = 11 : i64} {
  func.func @deepfm_kernel(%arg0: i32, %arg1: memref<128x128xbf16, #tpu.memory_space<vmem>>, %arg2: memref<1x128xf32, #tpu.memory_space<vmem>>, %arg3: memref<128x256xbf16, #tpu.memory_space<vmem>>, %arg4: memref<1x128xf32, #tpu.memory_space<vmem>>, %arg5: memref<128x128xbf16, #tpu.memory_space<vmem>>, %arg6: memref<1x128xf32, #tpu.memory_space<vmem>>, %arg7: memref<128x128xbf16, #tpu.memory_space<vmem>>, %arg8: memref<1x128xf32, #tpu.memory_space<vmem>>, %arg9: memref<1x128xf32, #tpu.memory_space<vmem>>, %arg10: memref<1xf32, #tpu.memory_space<smem>>, %arg11: memref<1x128xf32, #tpu.memory_space<vmem>>) attributes {dimension_semantics = [#tpu.dimension_semantics<parallel>], iteration_bounds = array<i64: 2>, scalar_prefetch = 0 : i64, scratch_operands = 0 : i64, tpu.core_type = #tpu.core_type<tc>, window_params = [{transform_indices = @transform_0, window_bounds = array<i64: 128, 128>}, {transform_indices = @transform_1, window_bounds = array<i64: 1, 128>}, {pipeline_mode = #tpu.pipeline_mode<synchronous>, transform_indices = @transform_2, window_bounds = array<i64: 128, 256>}, {pipeline_mode = #tpu.pipeline_mode<synchronous>, transform_indices = @transform_3, window_bounds = array<i64: 1, 128>}, {pipeline_mode = #tpu.pipeline_mode<synchronous>, transform_indices = @transform_4, window_bounds = array<i64: 128, 128>}, {pipeline_mode = #tpu.pipeline_mode<synchronous>, transform_indices = @transform_5, window_bounds = array<i64: 1, 128>}, {pipeline_mode = #tpu.pipeline_mode<synchronous>, transform_indices = @transform_6, window_bounds = array<i64: 128, 128>}, {pipeline_mode = #tpu.pipeline_mode<synchronous>, transform_indices = @transform_7, window_bounds = array<i64: 1, 128>}, {pipeline_mode = #tpu.pipeline_mode<synchronous>, transform_indices = @transform_8, window_bounds = array<i64: 1, 128>}, {transform_indices = @transform_9, window_bounds = array<i64: 1>}, {transform_indices = @transform_10, window_bounds = array<i64: 1, 128>}]} {
    %c0 = arith.constant 0 : index
    %c0_0 = arith.constant 0 : index
    %0 = vector.load %arg1[%c0, %c0_0] : memref<128x128xbf16, #tpu.memory_space<vmem>>, vector<128x128xbf16>
    %c0_1 = arith.constant 0 : index
    %c0_2 = arith.constant 0 : index
    %1 = vector.load %arg3[%c0_1, %c0_2] : memref<128x256xbf16, #tpu.memory_space<vmem>>, vector<128x256xbf16>
    %cst = arith.constant dense<0.000000e+00> : vector<128x256xf32>
    %2 = tpu.matmul %0, %1, %cst {dimension_numbers = #tpu.dot_dimension_numbers<[1], [0], [0], [1], [0, 0, 1, 1], [], []>} : vector<128x128xbf16>, vector<128x256xbf16>, vector<128x256xf32> -> vector<128x256xf32>
    %3 = vector.extract_strided_slice %2 {offsets = [0, 0], sizes = [128, 128], strides = [1, 1]} : vector<128x256xf32> to vector<128x128xf32>
    %4 = vector.extract_strided_slice %2 {offsets = [0, 128], sizes = [128, 128], strides = [1, 1]} : vector<128x256xf32> to vector<128x128xf32>
    %c0_3 = arith.constant 0 : index
    %c0_4 = arith.constant 0 : index
    %5 = vector.load %arg4[%c0_3, %c0_4] : memref<1x128xf32, #tpu.memory_space<vmem>>, vector<1x128xf32>
    %6 = vector.broadcast %5 : vector<1x128xf32> to vector<128x128xf32>
    %7 = arith.addf %4, %6 : vector<128x128xf32>
    %cst_5 = arith.constant 0.000000e+00 : f32
    %8 = vector.broadcast %cst_5 : f32 to vector<128x128xf32>
    %9 = arith.maximumf %7, %8 : vector<128x128xf32>
    %10 = arith.truncf %9 : vector<128x128xf32> to vector<128x128xbf16>
    %c0_6 = arith.constant 0 : index
    %c0_7 = arith.constant 0 : index
    %11 = vector.load %arg5[%c0_6, %c0_7] : memref<128x128xbf16, #tpu.memory_space<vmem>>, vector<128x128xbf16>
    %cst_8 = arith.constant dense<0.000000e+00> : vector<128x128xf32>
    %12 = tpu.matmul %10, %11, %cst_8 {dimension_numbers = #tpu.dot_dimension_numbers<[1], [0], [0], [1], [0, 0, 1, 1], [], []>} : vector<128x128xbf16>, vector<128x128xbf16>, vector<128x128xf32> -> vector<128x128xf32>
    %c0_9 = arith.constant 0 : index
    %c0_10 = arith.constant 0 : index
    %13 = vector.load %arg6[%c0_9, %c0_10] : memref<1x128xf32, #tpu.memory_space<vmem>>, vector<1x128xf32>
    %14 = vector.broadcast %13 : vector<1x128xf32> to vector<128x128xf32>
    %15 = arith.addf %12, %14 : vector<128x128xf32>
    %cst_11 = arith.constant 0.000000e+00 : f32
    %16 = vector.broadcast %cst_11 : f32 to vector<128x128xf32>
    %17 = arith.maximumf %15, %16 : vector<128x128xf32>
    %18 = arith.truncf %17 : vector<128x128xf32> to vector<128x128xbf16>
    %c0_12 = arith.constant 0 : index
    %c0_13 = arith.constant 0 : index
    %19 = vector.load %arg7[%c0_12, %c0_13] : memref<128x128xbf16, #tpu.memory_space<vmem>>, vector<128x128xbf16>
    %cst_14 = arith.constant dense<0.000000e+00> : vector<128x128xf32>
    %20 = tpu.matmul %18, %19, %cst_14 {dimension_numbers = #tpu.dot_dimension_numbers<[1], [0], [0], [1], [0, 0, 1, 1], [], []>} : vector<128x128xbf16>, vector<128x128xbf16>, vector<128x128xf32> -> vector<128x128xf32>
    %c0_15 = arith.constant 0 : index
    %c0_16 = arith.constant 0 : index
    %21 = vector.load %arg8[%c0_15, %c0_16] : memref<1x128xf32, #tpu.memory_space<vmem>>, vector<1x128xf32>
    %22 = vector.broadcast %21 : vector<1x128xf32> to vector<128x128xf32>
    %23 = arith.addf %20, %22 : vector<128x128xf32>
    %cst_17 = arith.constant 0.000000e+00 : f32
    %24 = vector.broadcast %cst_17 : f32 to vector<128x128xf32>
    %25 = arith.maximumf %23, %24 : vector<128x128xf32>
    %26 = arith.mulf %3, %3 : vector<128x128xf32>
    %c0_18 = arith.constant 0 : index
    %27 = memref.load %arg10[%c0_18] : memref<1xf32, #tpu.memory_space<smem>>
    %28 = vector.broadcast %27 : f32 to vector<128x128xf32>
    %29 = arith.mulf %26, %28 : vector<128x128xf32>
    %c0_19 = arith.constant 0 : index
    %c0_20 = arith.constant 0 : index
    %30 = vector.load %arg9[%c0_19, %c0_20] : memref<1x128xf32, #tpu.memory_space<vmem>>, vector<1x128xf32>
    %31 = vector.broadcast %30 : vector<1x128xf32> to vector<128x128xf32>
    %32 = arith.mulf %25, %31 : vector<128x128xf32>
    %33 = arith.addf %29, %32 : vector<128x128xf32>
    %cst_21 = arith.constant 1.000000e+00 : f32
    %34 = vector.broadcast %cst_21 : f32 to vector<8x128xf32>
    %cst_22 = arith.constant dense<0.000000e+00> : vector<8x128xf32>
    %35 = tpu.matmul %34, %33, %cst_22 {dimension_numbers = #tpu.dot_dimension_numbers<[1], [1], [0], [0], [0, 0, 1, 0], [], []>} : vector<8x128xf32>, vector<128x128xf32>, vector<8x128xf32> -> vector<8x128xf32>
    %36 = vector.extract_strided_slice %35 {offsets = [0, 0], sizes = [1, 128], strides = [1, 1]} : vector<8x128xf32> to vector<1x128xf32>
    %c0_23 = arith.constant 0 : index
    %c0_24 = arith.constant 0 : index
    %37 = vector.load %arg2[%c0_23, %c0_24] : memref<1x128xf32, #tpu.memory_space<vmem>>, vector<1x128xf32>
    %38 = arith.addf %36, %37 : vector<1x128xf32>
    %39 = arith.negf %38 : vector<1x128xf32>
    %40 = math.exp %39 : vector<1x128xf32>
    %cst_25 = arith.constant 1.000000e+00 : f32
    %41 = vector.broadcast %cst_25 : f32 to vector<1x128xf32>
    %42 = arith.addf %41, %40 : vector<1x128xf32>
    %43 = arith.divf %41, %42 : vector<1x128xf32>
    %c0_26 = arith.constant 0 : index
    %c0_27 = arith.constant 0 : index
    %44 = vector.load %arg11[%c0_26, %c0_27] : memref<1x128xf32, #tpu.memory_space<vmem>>, vector<1x128xf32>
    tpu.vector_store %arg11[%c0_26, %c0_27], %43 {strides = array<i32>} : memref<1x128xf32, #tpu.memory_space<vmem>>, vector<1x128xf32>,
    return
  }
  func.func @transform_0(%arg0: i32) -> (i32, i32) {
    %c0_i32 = arith.constant 0 : i32
    %c0_i32_0 = arith.constant 0 : i32
    return %arg0, %c0_i32 : i32, i32
  }
  func.func @transform_1(%arg0: i32) -> (i32, i32) {
    %c0_i32 = arith.constant 0 : i32
    %c0_i32_0 = arith.constant 0 : i32
    return %c0_i32, %arg0 : i32, i32
  }
  func.func @transform_2(%arg0: i32) -> (i32, i32) {
    %c0_i32 = arith.constant 0 : i32
    %c0_i32_0 = arith.constant 0 : i32
    %c0_i32_1 = arith.constant 0 : i32
    return %c0_i32, %c0_i32_0 : i32, i32
  }
  func.func @transform_3(%arg0: i32) -> (i32, i32) {
    %c0_i32 = arith.constant 0 : i32
    %c0_i32_0 = arith.constant 0 : i32
    %c0_i32_1 = arith.constant 0 : i32
    return %c0_i32, %c0_i32_0 : i32, i32
  }
  func.func @transform_4(%arg0: i32) -> (i32, i32) {
    %c0_i32 = arith.constant 0 : i32
    %c0_i32_0 = arith.constant 0 : i32
    %c0_i32_1 = arith.constant 0 : i32
    return %c0_i32, %c0_i32_0 : i32, i32
  }
  func.func @transform_5(%arg0: i32) -> (i32, i32) {
    %c0_i32 = arith.constant 0 : i32
    %c0_i32_0 = arith.constant 0 : i32
    %c0_i32_1 = arith.constant 0 : i32
    return %c0_i32, %c0_i32_0 : i32, i32
  }
  func.func @transform_6(%arg0: i32) -> (i32, i32) {
    %c0_i32 = arith.constant 0 : i32
    %c0_i32_0 = arith.constant 0 : i32
    %c0_i32_1 = arith.constant 0 : i32
    return %c0_i32, %c0_i32_0 : i32, i32
  }
  func.func @transform_7(%arg0: i32) -> (i32, i32) {
    %c0_i32 = arith.constant 0 : i32
    %c0_i32_0 = arith.constant 0 : i32
    %c0_i32_1 = arith.constant 0 : i32
    return %c0_i32, %c0_i32_0 : i32, i32
  }
  func.func @transform_8(%arg0: i32) -> (i32, i32) {
    %c0_i32 = arith.constant 0 : i32
    %c0_i32_0 = arith.constant 0 : i32
    %c0_i32_1 = arith.constant 0 : i32
    return %c0_i32, %c0_i32_0 : i32, i32
  }
  func.func @transform_9(%arg0: i32) -> i32 {
    %c0_i32 = arith.constant 0 : i32
    %c0_i32_0 = arith.constant 0 : i32
    return %c0_i32 : i32
  }
  func.func @transform_10(%arg0: i32) -> (i32, i32) {
    %c0_i32 = arith.constant 0 : i32
    %c0_i32_0 = arith.constant 0 : i32
    return %c0_i32, %arg0 : i32, i32
  }
}

</mosaic_0001>

<bundles_post_ra>
// kernel: squeeze.1
= control target key start
LH: loop header
LB: loop body
LE: loop exit
PB: predicated region body
PF: predicated region fallthrough
CT: control target
= control target key end

     0   :  { %vm3_vm0 = vcmask 64512   ;;  %s550_s10 = smov 120   ;;  %s551_s27 = smov 104   ;;  %s1092_s0 = inlined_call_operand.vmem [shape: f32[2048], index: 0, kind: input, shape index: {}]   ;;  %s1093_s1 = inlined_call_operand.vmem [shape: f32[256,8], index: 1, kind: output, shape index: {}]  }
   0x1   :  { %v44_v0 = vld [vmem:[%s1092_s0] sm:$0xff]   ;;  %v412_v1 = vld [vmem:[%s1092_s0 + $0x8] sm:$0xff]   ;;  %s549_s0 = smov 112   ;;  %s552_s28 = smov 96  }
   0x2   :  { %45 = vrot.lane.b32.xlu1 %v44_v0, %s549_s0  ;;  %20 = vrot.lane.b32.xlu0 %v44_v0, %s550_s10  ;;  %4 = vst.msk [vmem:[%s1093_s1] ss:$16 sm:$0x3] %vm3_vm0, %v44_v0   ;;  %5 = vst.msk [vmem:[%s1093_s1] ss:$16 sm:$0xc] %vm3_vm0, %v44_v0  }
   0x3   :  { %6 = vst.msk [vmem:[%s1093_s1] ss:$16 sm:$0x30] %vm3_vm0, %v44_v0   ;;  %7 = vst.msk [vmem:[%s1093_s1] ss:$16 sm:$0xc0] %vm3_vm0, %v44_v0  }
   0x4   :  { %395 = vst.msk [vmem:[%s1093_s1 + $0x80] ss:$16 sm:$0x3] %vm3_vm0, %v412_v1   ;;  %396 = vst.msk [vmem:[%s1093_s1 + $0x80] ss:$16 sm:$0xc] %vm3_vm0, %v412_v1  }
   0x5   :  { %397 = vst.msk [vmem:[%s1093_s1 + $0x80] ss:$16 sm:$0x30] %vm3_vm0, %v412_v1   ;;  %398 = vst.msk [vmem:[%s1093_s1 + $0x80] ss:$16 sm:$0xc0] %vm3_vm0, %v412_v1  }
   0x6   :  { %58 = vrot.lane.b32.xlu1 %v412_v1, %s549_s0  ;;  %33 = vrot.lane.b32.xlu0 %v412_v1, %s550_s10  ;;  %s553_s29 = smov 88   ;;  %s554_s30 = smov 80  }
   0x7   :  { %s555_s2 = smov 72   ;;  %s556_s3 = smov 64  }
   0x8   :  { %s557_s4 = smov 56   ;;  %s558_s5 = smov 48  }
   0x9   :  { %s559_s6 = smov 40   ;;  %s560_s7 = smov 32  }
   0xa   :  { %83 = vrot.lane.b32.xlu1 %v412_v1, %s551_s27  ;;  %70 = vrot.lane.b32.xlu0 %v44_v0, %s551_s27  ;;  %s561_s8 = smov 24   ;;  %s562_s9 = smov 16  }
   0xb   :  { %s563_s0 = smov 8  }
   0xe   :  { %108 = vrot.lane.b32.xlu1 %v412_v1, %s552_s28  ;;  %95 = vrot.lane.b32.xlu0 %v44_v0, %s552_s28 }
  0x12   :  { %133 = vrot.lane.b32.xlu1 %v412_v1, %s553_s29  ;;  %120 = vrot.lane.b32.xlu0 %v44_v0, %s553_s29 }
  0x16   :  { %158 = vrot.lane.b32.xlu1 %v412_v1, %s554_s30  ;;  %145 = vrot.lane.b32.xlu0 %v44_v0, %s554_s30 }
  0x1a   :  { %183 = vrot.lane.b32.xlu1 %v412_v1, %s555_s2  ;;  %170 = vrot.lane.b32.xlu0 %v44_v0, %s555_s2 }
  0x1e   :  { %208 = vrot.lane.b32.xlu1 %v412_v1, %s556_s3  ;;  %195 = vrot.lane.b32.xlu0 %v44_v0, %s556_s3 }
  0x22   :  { %233 = vrot.lane.b32.xlu1 %v412_v1, %s557_s4  ;;  %220 = vrot.lane.b32.xlu0 %v44_v0, %s557_s4 }
  0x26   :  { %258 = vrot.lane.b32.xlu1 %v412_v1, %s558_s5  ;;  %245 = vrot.lane.b32.xlu0 %v44_v0, %s558_s5 }
  0x2a   :  { %283 = vrot.lane.b32.xlu1 %v412_v1, %s559_s6  ;;  %270 = vrot.lane.b32.xlu0 %v44_v0, %s559_s6 }
  0x2e   :  { %308 = vrot.lane.b32.xlu1 %v412_v1, %s560_s7  ;;  %295 = vrot.lane.b32.xlu0 %v44_v0, %s560_s7 }
  0x32   :  { %333 = vrot.lane.b32.xlu1 %v412_v1, %s561_s8  ;;  %320 = vrot.lane.b32.xlu0 %v44_v0, %s561_s8 }
  0x36   :  { %358 = vrot.lane.b32.xlu1 %v412_v1, %s562_s9  ;;  %345 = vrot.lane.b32.xlu0 %v44_v0, %s562_s9 }
  0x3a   :  { %383 = vrot.lane.b32.xlu1 %v412_v1, %s563_s0  ;;  %370 = vrot.lane.b32.xlu0 %v44_v0, %s563_s0 }
  0x74   :  { %v46_v2 = vpop.permute.xlu1 %45   ;;  %v21_v3 = vpop.permute.xlu0 %20  }
  0x75   :  { %408 = vst.msk [vmem:[%s1093_s1 + $0x2] ss:$16 sm:$0x3] %vm3_vm0, %v46_v2   ;;  %409 = vst.msk [vmem:[%s1093_s1 + $0x2] ss:$16 sm:$0xc] %vm3_vm0, %v46_v2  }
  0x76   :  { %410 = vst.msk [vmem:[%s1093_s1 + $0x2] ss:$16 sm:$0x30] %vm3_vm0, %v46_v2   ;;  %411 = vst.msk [vmem:[%s1093_s1 + $0x2] ss:$16 sm:$0xc0] %vm3_vm0, %v46_v2  }
  0x77   :  { %399 = vst.msk [vmem:[%s1093_s1 + $0x1] ss:$16 sm:$0x3] %vm3_vm0, %v21_v3   ;;  %400 = vst.msk [vmem:[%s1093_s1 + $0x1] ss:$16 sm:$0xc] %vm3_vm0, %v21_v3  }
  0x78   :  { %401 = vst.msk [vmem:[%s1093_s1 + $0x1] ss:$16 sm:$0x30] %vm3_vm0, %v21_v3   ;;  %402 = vst.msk [vmem:[%s1093_s1 + $0x1] ss:$16 sm:$0xc0] %vm3_vm0, %v21_v3   ;;  %v59_v4 = vpop.permute.xlu1 %58   ;;  %v34_v5 = vpop.permute.xlu0 %33  }
  0x79   :  { %413 = vst.msk [vmem:[%s1093_s1 + $0x82] ss:$16 sm:$0x3] %vm3_vm0, %v59_v4   ;;  %414 = vst.msk [vmem:[%s1093_s1 + $0x82] ss:$16 sm:$0xc] %vm3_vm0, %v59_v4  }
  0x7a   :  { %415 = vst.msk [vmem:[%s1093_s1 + $0x82] ss:$16 sm:$0x30] %vm3_vm0, %v59_v4   ;;  %416 = vst.msk [vmem:[%s1093_s1 + $0x82] ss:$16 sm:$0xc0] %vm3_vm0, %v59_v4  }
  0x7b   :  { %404 = vst.msk [vmem:[%s1093_s1 + $0x81] ss:$16 sm:$0x3] %vm3_vm0, %v34_v5   ;;  %405 = vst.msk [vmem:[%s1093_s1 + $0x81] ss:$16 sm:$0xc] %vm3_vm0, %v34_v5  }
  0x7c   :  { %406 = vst.msk [vmem:[%s1093_s1 + $0x81] ss:$16 sm:$0x30] %vm3_vm0, %v34_v5   ;;  %407 = vst.msk [vmem:[%s1093_s1 + $0x81] ss:$16 sm:$0xc0] %vm3_vm0, %v34_v5   ;;  %v84_v6 = vpop.permute.xlu1 %83   ;;  %v71_v7 = vpop.permute.xlu0 %70  }
  0x7d   :  { %422 = vst.msk [vmem:[%s1093_s1 + $0x83] ss:$16 sm:$0x3] %vm3_vm0, %v84_v6   ;;  %423 = vst.msk [vmem:[%s1093_s1 + $0x83] ss:$16 sm:$0xc] %vm3_vm0, %v84_v6  }
  0x7e   :  { %424 = vst.msk [vmem:[%s1093_s1 + $0x83] ss:$16 sm:$0x30] %vm3_vm0, %v84_v6   ;;  %425 = vst.msk [vmem:[%s1093_s1 + $0x83] ss:$16 sm:$0xc0] %vm3_vm0, %v84_v6  }
  0x7f   :  { %417 = vst.msk [vmem:[%s1093_s1 + $0x3] ss:$16 sm:$0x3] %vm3_vm0, %v71_v7   ;;  %418 = vst.msk [vmem:[%s1093_s1 + $0x3] ss:$16 sm:$0xc] %vm3_vm0, %v71_v7  }
  0x80   :  { %419 = vst.msk [vmem:[%s1093_s1 + $0x3] ss:$16 sm:$0x30] %vm3_vm0, %v71_v7   ;;  %420 = vst.msk [vmem:[%s1093_s1 + $0x3] ss:$16 sm:$0xc0] %vm3_vm0, %v71_v7   ;;  %v109_v8 = vpop.permute.xlu1 %108   ;;  %v96_v9 = vpop.permute.xlu0 %95  }
  0x81   :  { %431 = vst.msk [vmem:[%s1093_s1 + $0x84] ss:$16 sm:$0x3] %vm3_vm0, %v109_v8   ;;  %432 = vst.msk [vmem:[%s1093_s1 + $0x84] ss:$16 sm:$0xc] %vm3_vm0, %v109_v8  }
  0x82   :  { %433 = vst.msk [vmem:[%s1093_s1 + $0x84] ss:$16 sm:$0x30] %vm3_vm0, %v109_v8   ;;  %434 = vst.msk [vmem:[%s1093_s1 + $0x84] ss:$16 sm:$0xc0] %vm3_vm0, %v109_v8  }
  0x83   :  { %426 = vst.msk [vmem:[%s1093_s1 + $0x4] ss:$16 sm:$0x3] %vm3_vm0, %v96_v9   ;;  %427 = vst.msk [vmem:[%s1093_s1 + $0x4] ss:$16 sm:$0xc] %vm3_vm0, %v96_v9  }
  0x84   :  { %428 = vst.msk [vmem:[%s1093_s1 + $0x4] ss:$16 sm:$0x30] %vm3_vm0, %v96_v9   ;;  %429 = vst.msk [vmem:[%s1093_s1 + $0x4] ss:$16 sm:$0xc0] %vm3_vm0, %v96_v9   ;;  %v134_v10 = vpop.permute.xlu1 %133   ;;  %v121_v11 = vpop.permute.xlu0 %120  }
  0x85   :  { %440 = vst.msk [vmem:[%s1093_s1 + $0x85] ss:$16 sm:$0x3] %vm3_vm0, %v134_v10   ;;  %441 = vst.msk [vmem:[%s1093_s1 + $0x85] ss:$16 sm:$0xc] %vm3_vm0, %v134_v10  }
  0x86   :  { %442 = vst.msk [vmem:[%s1093_s1 + $0x85] ss:$16 sm:$0x30] %vm3_vm0, %v134_v10   ;;  %443 = vst.msk [vmem:[%s1093_s1 + $0x85] ss:$16 sm:$0xc0] %vm3_vm0, %v134_v10  }
  0x87   :  { %435 = vst.msk [vmem:[%s1093_s1 + $0x5] ss:$16 sm:$0x3] %vm3_vm0, %v121_v11   ;;  %436 = vst.msk [vmem:[%s1093_s1 + $0x5] ss:$16 sm:$0xc] %vm3_vm0, %v121_v11  }
  0x88   :  { %437 = vst.msk [vmem:[%s1093_s1 + $0x5] ss:$16 sm:$0x30] %vm3_vm0, %v121_v11   ;;  %438 = vst.msk [vmem:[%s1093_s1 + $0x5] ss:$16 sm:$0xc0] %vm3_vm0, %v121_v11   ;;  %v159_v12 = vpop.permute.xlu1 %158   ;;  %v146_v13 = vpop.permute.xlu0 %145  }
  0x89   :  { %449 = vst.msk [vmem:[%s1093_s1 + $0x86] ss:$16 sm:$0x3] %vm3_vm0, %v159_v12   ;;  %450 = vst.msk [vmem:[%s1093_s1 + $0x86] ss:$16 sm:$0xc] %vm3_vm0, %v159_v12  }
  0x8a   :  { %451 = vst.msk [vmem:[%s1093_s1 + $0x86] ss:$16 sm:$0x30] %vm3_vm0, %v159_v12   ;;  %452 = vst.msk [vmem:[%s1093_s1 + $0x86] ss:$16 sm:$0xc0] %vm3_vm0, %v159_v12  }
  0x8b   :  { %444 = vst.msk [vmem:[%s1093_s1 + $0x6] ss:$16 sm:$0x3] %vm3_vm0, %v146_v13   ;;  %445 = vst.msk [vmem:[%s1093_s1 + $0x6] ss:$16 sm:$0xc] %vm3_vm0, %v146_v13  }
  0x8c   :  { %446 = vst.msk [vmem:[%s1093_s1 + $0x6] ss:$16 sm:$0x30] %vm3_vm0, %v146_v13   ;;  %447 = vst.msk [vmem:[%s1093_s1 + $0x6] ss:$16 sm:$0xc0] %vm3_vm0, %v146_v13   ;;  %v184_v14 = vpop.permute.xlu1 %183   ;;  %v171_v15 = vpop.permute.xlu0 %170  }
  0x8d   :  { %458 = vst.msk [vmem:[%s1093_s1 + $0x87] ss:$16 sm:$0x3] %vm3_vm0, %v184_v14   ;;  %459 = vst.msk [vmem:[%s1093_s1 + $0x87] ss:$16 sm:$0xc] %vm3_vm0, %v184_v14  }
  0x8e   :  { %460 = vst.msk [vmem:[%s1093_s1 + $0x87] ss:$16 sm:$0x30] %vm3_vm0, %v184_v14   ;;  %461 = vst.msk [vmem:[%s1093_s1 + $0x87] ss:$16 sm:$0xc0] %vm3_vm0, %v184_v14  }
  0x8f   :  { %453 = vst.msk [vmem:[%s1093_s1 + $0x7] ss:$16 sm:$0x3] %vm3_vm0, %v171_v15   ;;  %454 = vst.msk [vmem:[%s1093_s1 + $0x7] ss:$16 sm:$0xc] %vm3_vm0, %v171_v15  }
  0x90   :  { %455 = vst.msk [vmem:[%s1093_s1 + $0x7] ss:$16 sm:$0x30] %vm3_vm0, %v171_v15   ;;  %456 = vst.msk [vmem:[%s1093_s1 + $0x7] ss:$16 sm:$0xc0] %vm3_vm0, %v171_v15   ;;  %v209_v16 = vpop.permute.xlu1 %208   ;;  %v196_v17 = vpop.permute.xlu0 %195  }
  0x91   :  { %467 = vst.msk [vmem:[%s1093_s1 + $0x88] ss:$16 sm:$0x3] %vm3_vm0, %v209_v16   ;;  %468 = vst.msk [vmem:[%s1093_s1 + $0x88] ss:$16 sm:$0xc] %vm3_vm0, %v209_v16  }
  0x92   :  { %469 = vst.msk [vmem:[%s1093_s1 + $0x88] ss:$16 sm:$0x30] %vm3_vm0, %v209_v16   ;;  %470 = vst.msk [vmem:[%s1093_s1 + $0x88] ss:$16 sm:$0xc0] %vm3_vm0, %v209_v16  }
  0x93   :  { %462 = vst.msk [vmem:[%s1093_s1 + $0x8] ss:$16 sm:$0x3] %vm3_vm0, %v196_v17   ;;  %463 = vst.msk [vmem:[%s1093_s1 + $0x8] ss:$16 sm:$0xc] %vm3_vm0, %v196_v17  }
  0x94   :  { %464 = vst.msk [vmem:[%s1093_s1 + $0x8] ss:$16 sm:$0x30] %vm3_vm0, %v196_v17   ;;  %465 = vst.msk [vmem:[%s1093_s1 + $0x8] ss:$16 sm:$0xc0] %vm3_vm0, %v196_v17   ;;  %v234_v18 = vpop.permute.xlu1 %233   ;;  %v221_v19 = vpop.permute.xlu0 %220  }
  0x95   :  { %476 = vst.msk [vmem:[%s1093_s1 + $0x89] ss:$16 sm:$0x3] %vm3_vm0, %v234_v18   ;;  %477 = vst.msk [vmem:[%s1093_s1 + $0x89] ss:$16 sm:$0xc] %vm3_vm0, %v234_v18  }
  0x96   :  { %478 = vst.msk [vmem:[%s1093_s1 + $0x89] ss:$16 sm:$0x30] %vm3_vm0, %v234_v18   ;;  %479 = vst.msk [vmem:[%s1093_s1 + $0x89] ss:$16 sm:$0xc0] %vm3_vm0, %v234_v18  }
  0x97   :  { %471 = vst.msk [vmem:[%s1093_s1 + $0x9] ss:$16 sm:$0x3] %vm3_vm0, %v221_v19   ;;  %472 = vst.msk [vmem:[%s1093_s1 + $0x9] ss:$16 sm:$0xc] %vm3_vm0, %v221_v19  }
  0x98   :  { %473 = vst.msk [vmem:[%s1093_s1 + $0x9] ss:$16 sm:$0x30] %vm3_vm0, %v221_v19   ;;  %474 = vst.msk [vmem:[%s1093_s1 + $0x9] ss:$16 sm:$0xc0] %vm3_vm0, %v221_v19   ;;  %v259_v20 = vpop.permute.xlu1 %258   ;;  %v246_v21 = vpop.permute.xlu0 %245  }
  0x99   :  { %485 = vst.msk [vmem:[%s1093_s1 + $0x8a] ss:$16 sm:$0x3] %vm3_vm0, %v259_v20   ;;  %486 = vst.msk [vmem:[%s1093_s1 + $0x8a] ss:$16 sm:$0xc] %vm3_vm0, %v259_v20  }
  0x9a   :  { %487 = vst.msk [vmem:[%s1093_s1 + $0x8a] ss:$16 sm:$0x30] %vm3_vm0, %v259_v20   ;;  %488 = vst.msk [vmem:[%s1093_s1 + $0x8a] ss:$16 sm:$0xc0] %vm3_vm0, %v259_v20  }
  0x9b   :  { %480 = vst.msk [vmem:[%s1093_s1 + $0xa] ss:$16 sm:$0x3] %vm3_vm0, %v246_v21   ;;  %481 = vst.msk [vmem:[%s1093_s1 + $0xa] ss:$16 sm:$0xc] %vm3_vm0, %v246_v21  }
  0x9c   :  { %482 = vst.msk [vmem:[%s1093_s1 + $0xa] ss:$16 sm:$0x30] %vm3_vm0, %v246_v21   ;;  %483 = vst.msk [vmem:[%s1093_s1 + $0xa] ss:$16 sm:$0xc0] %vm3_vm0, %v246_v21   ;;  %v284_v22 = vpop.permute.xlu1 %283   ;;  %v271_v23 = vpop.permute.xlu0 %270  }
  0x9d   :  { %494 = vst.msk [vmem:[%s1093_s1 + $0x8b] ss:$16 sm:$0x3] %vm3_vm0, %v284_v22   ;;  %495 = vst.msk [vmem:[%s1093_s1 + $0x8b] ss:$16 sm:$0xc] %vm3_vm0, %v284_v22  }
  0x9e   :  { %496 = vst.msk [vmem:[%s1093_s1 + $0x8b] ss:$16 sm:$0x30] %vm3_vm0, %v284_v22   ;;  %497 = vst.msk [vmem:[%s1093_s1 + $0x8b] ss:$16 sm:$0xc0] %vm3_vm0, %v284_v22  }
  0x9f   :  { %489 = vst.msk [vmem:[%s1093_s1 + $0xb] ss:$16 sm:$0x3] %vm3_vm0, %v271_v23   ;;  %490 = vst.msk [vmem:[%s1093_s1 + $0xb] ss:$16 sm:$0xc] %vm3_vm0, %v271_v23  }
  0xa0   :  { %491 = vst.msk [vmem:[%s1093_s1 + $0xb] ss:$16 sm:$0x30] %vm3_vm0, %v271_v23   ;;  %492 = vst.msk [vmem:[%s1093_s1 + $0xb] ss:$16 sm:$0xc0] %vm3_vm0, %v271_v23   ;;  %v309_v24 = vpop.permute.xlu1 %308   ;;  %v296_v25 = vpop.permute.xlu0 %295  }
  0xa1   :  { %503 = vst.msk [vmem:[%s1093_s1 + $0x8c] ss:$16 sm:$0x3] %vm3_vm0, %v309_v24   ;;  %504 = vst.msk [vmem:[%s1093_s1 + $0x8c] ss:$16 sm:$0xc] %vm3_vm0, %v309_v24  }
  0xa2   :  { %505 = vst.msk [vmem:[%s1093_s1 + $0x8c] ss:$16 sm:$0x30] %vm3_vm0, %v309_v24   ;;  %506 = vst.msk [vmem:[%s1093_s1 + $0x8c] ss:$16 sm:$0xc0] %vm3_vm0, %v309_v24  }
  0xa3   :  { %498 = vst.msk [vmem:[%s1093_s1 + $0xc] ss:$16 sm:$0x3] %vm3_vm0, %v296_v25   ;;  %499 = vst.msk [vmem:[%s1093_s1 + $0xc] ss:$16 sm:$0xc] %vm3_vm0, %v296_v25  }
  0xa4   :  { %500 = vst.msk [vmem:[%s1093_s1 + $0xc] ss:$16 sm:$0x30] %vm3_vm0, %v296_v25   ;;  %501 = vst.msk [vmem:[%s1093_s1 + $0xc] ss:$16 sm:$0xc0] %vm3_vm0, %v296_v25   ;;  %v334_v26 = vpop.permute.xlu1 %333   ;;  %v321_v27 = vpop.permute.xlu0 %320  }
  0xa5   :  { %512 = vst.msk [vmem:[%s1093_s1 + $0x8d] ss:$16 sm:$0x3] %vm3_vm0, %v334_v26   ;;  %513 = vst.msk [vmem:[%s1093_s1 + $0x8d] ss:$16 sm:$0xc] %vm3_vm0, %v334_v26  }
  0xa6   :  { %514 = vst.msk [vmem:[%s1093_s1 + $0x8d] ss:$16 sm:$0x30] %vm3_vm0, %v334_v26   ;;  %515 = vst.msk [vmem:[%s1093_s1 + $0x8d] ss:$16 sm:$0xc0] %vm3_vm0, %v334_v26  }
  0xa7   :  { %507 = vst.msk [vmem:[%s1093_s1 + $0xd] ss:$16 sm:$0x3] %vm3_vm0, %v321_v27   ;;  %508 = vst.msk [vmem:[%s1093_s1 + $0xd] ss:$16 sm:$0xc] %vm3_vm0, %v321_v27  }
  0xa8   :  { %509 = vst.msk [vmem:[%s1093_s1 + $0xd] ss:$16 sm:$0x30] %vm3_vm0, %v321_v27   ;;  %510 = vst.msk [vmem:[%s1093_s1 + $0xd] ss:$16 sm:$0xc0] %vm3_vm0, %v321_v27   ;;  %v359_v28 = vpop.permute.xlu1 %358   ;;  %v346_v29 = vpop.permute.xlu0 %345  }
  0xa9   :  { %521 = vst.msk [vmem:[%s1093_s1 + $0x8e] ss:$16 sm:$0x3] %vm3_vm0, %v359_v28   ;;  %522 = vst.msk [vmem:[%s1093_s1 + $0x8e] ss:$16 sm:$0xc] %vm3_vm0, %v359_v28  }
  0xaa   :  { %523 = vst.msk [vmem:[%s1093_s1 + $0x8e] ss:$16 sm:$0x30] %vm3_vm0, %v359_v28   ;;  %524 = vst.msk [vmem:[%s1093_s1 + $0x8e] ss:$16 sm:$0xc0] %vm3_vm0, %v359_v28  }
  0xab   :  { %516 = vst.msk [vmem:[%s1093_s1 + $0xe] ss:$16 sm:$0x3] %vm3_vm0, %v346_v29   ;;  %517 = vst.msk [vmem:[%s1093_s1 + $0xe] ss:$16 sm:$0xc] %vm3_vm0, %v346_v29  }
  0xac   :  { %518 = vst.msk [vmem:[%s1093_s1 + $0xe] ss:$16 sm:$0x30] %vm3_vm0, %v346_v29   ;;  %519 = vst.msk [vmem:[%s1093_s1 + $0xe] ss:$16 sm:$0xc0] %vm3_vm0, %v346_v29   ;;  %v384_v30 = vpop.permute.xlu1 %383   ;;  %v371_v31 = vpop.permute.xlu0 %370  }
  0xad   :  { %530 = vst.msk [vmem:[%s1093_s1 + $0x8f] ss:$16 sm:$0x3] %vm3_vm0, %v384_v30   ;;  %531 = vst.msk [vmem:[%s1093_s1 + $0x8f] ss:$16 sm:$0xc] %vm3_vm0, %v384_v30  }
  0xae   :  { %532 = vst.msk [vmem:[%s1093_s1 + $0x8f] ss:$16 sm:$0x30] %vm3_vm0, %v384_v30   ;;  %533 = vst.msk [vmem:[%s1093_s1 + $0x8f] ss:$16 sm:$0xc0] %vm3_vm0, %v384_v30  }
  0xaf   :  { %525 = vst.msk [vmem:[%s1093_s1 + $0xf] ss:$16 sm:$0x3] %vm3_vm0, %v371_v31   ;;  %526 = vst.msk [vmem:[%s1093_s1 + $0xf] ss:$16 sm:$0xc] %vm3_vm0, %v371_v31  }
  0xb0   :  { %527 = vst.msk [vmem:[%s1093_s1 + $0xf] ss:$16 sm:$0x30] %vm3_vm0, %v371_v31   ;;  %528 = vst.msk [vmem:[%s1093_s1 + $0xf] ss:$16 sm:$0xc0] %vm3_vm0, %v371_v31  }

// kernel: _lambda_.1
= control target key start
LH: loop header
LB: loop body
LE: loop exit
PB: predicated region body
PF: predicated region fallthrough
CT: control target
= control target key end

     0   :  { %s2123_s0 = inlined_call_operand.vmem [shape: bf16[256,128], index: 0, kind: input, shape index: {}]   ;;  %s2124_s1 = inlined_call_operand.vmem [shape: f32[1,256], index: 1, kind: input, shape index: {}]   ;;  %s2125_s2 = inlined_call_operand.vmem [shape: bf16[128,256], index: 2, kind: input, shape index: {}]   ;;  %s2126_s3 = inlined_call_operand.vmem [shape: f32[1,128], index: 3, kind: input, shape index: {}]   ;;  %s2127_s4 = inlined_call_operand.vmem [shape: bf16[128,128], index: 4, kind: input, shape index: {}]   ;;  %s2128_s5 = inlined_call_operand.vmem [shape: f32[1,128], index: 5, kind: input, shape index: {}]   ;;  %s2129_s6 = inlined_call_operand.vmem [shape: bf16[128,128], index: 6, kind: input, shape index: {}]   ;;  %s2130_s7 = inlined_call_operand.vmem [shape: f32[1,128], index: 7, kind: input, shape index: {}]   ;;  %s2131_s8 = inlined_call_operand.vmem [shape: f32[1,128], index: 8, kind: input, shape index: {}]   ;;  %s2132_s9 = inlined_call_operand.<no memory space> [shape: f32[1], index: 9, kind: input, shape index: {}]   ;;  %s2133_s10 = inlined_call_operand.hbm [shape: f32[1,256], index: 10, kind: output, shape index: {}]  }
   0x1   :  { %15 = sst [smem:[#allocation2]] %s2132_s9 }
   0x2   :  { %16 = vsyncpa [#allocation4], 0 }
   0x3   :  { %18 = vsyncpa [#allocation4 + $0x1], 0  ;;  %s1722_s15 = smov 0   ;;  %s1724_s16 = smov 0  }
   0x4   :  { %s1726_s17 = smov 0   ;;  %s1728_s18 = smov 0  }
   0x5 LB: > { %s1743_s9 = sadd.s32 4294967295, %s1657_s18   ;;  %s1300_s19 = sadd.s32 4294967294, %s1657_s18   ;;  %s1657_s18 = sphi %s1728_s18, %s2141_s18   ;;  %s1653_s17 = sphi %s1726_s17, %s2140_s17   ;;  %s1649_s16 = sphi %s1724_s16, %s2139_s16   ;;  %s1645_s15 = sphi %s1722_s15, %s2138_s15  }
   0x6   : > { %s1747_s20 = sadd.s32 1, %s1657_s18   ;;  %s251_s21 = sadd.s32 1, %s1653_s17 }
   0x7   : > { %s248_s22 = ssub.s32 %s1657_s18, %s1747_s20  ;;  %p261_p0 = scmp.ne.s32.totalorder %s1653_s17, %s1649_s16 }
   0x8   : > { %p249_p1 = scmp.eq.s32.totalorder %s248_s22, 0  ;;  %p262_p2 = scmp.eq.s32.totalorder %s1743_s9, 1 }
   0x9   : > { %p267_p3 = scmp.ne.s32.totalorder %s1649_s16, %s1645_s15  ;;  %p268_p4 = scmp.eq.s32.totalorder %s1300_s19, 1 }
   0xa   : > { %s1758_s23 = scalar_select %p249_p1, %s1653_s17, %s251_s21  }
   0xb   : > { %p1760_p5 = por %p262_p2, %p261_p0  ;;  %p1764_p6 = por %p268_p4, %p267_p3 }
   0xc   : > { %2134 = sst [smem:[#allocation6_spill]] %s1758_s23  ;;  %p1303_p7 = scmp.ge.s32.totalorder %s1657_s18, 1 }
   0xd   : > { %p325_p8 = scmp.lt.s32.totalorder %s1657_s18, 3 }
   0xf   : > { %p326_p9 = pnand %p1303_p7, %p325_p8 }
  0x10   : > { %s1774_s28 = sshll.u32 (!%p326_p9), %s1743_s9, 4  ;;  %p371_p11 = scmp.lt.s32.totalorder (!%p326_p9), %s1743_s9, 1 }
  0x11   : > { %329 = sbr.rel (%p326_p9) target bundleno = 1030 (0x406), region = 60  ;;  %p366_p10 = scmp.lt.s32.totalorder (!%p326_p9), %s1774_s28, 31 }
  0x12   : > { %s363_s27 = sand.u32 (!%p326_p9), 1, %s1649_s16   ;;  %s1663_s23 = smov (!%p326_p9), [#allocation3]  }
  0x13   : > { %s364_s29 = scalar_lea.vmem (!%p326_p9), [#allocation3], %s363_s27  ;;  %s1601_s13 = sshll.u32 (!%p326_p9), %s1663_s23, 4  ;;  %s1602_s13 = int_to_ptr.vmem [resolvable:$false] %s1601_s13 }
  0x14   : > { %s1236_s30 = sshll.u32 (!%p326_p9), %s364_s29, 4  ;;  %s1603_s21 = scalar_lea.vmem (!%p326_p9), %s1602_s13, 32  ;;  %s1237_s30 = int_to_ptr.vmem [resolvable:$true] %s1236_s30 }
  0x15   : > { %s1597_s12 = scalar_lea.vmem (!%p326_p9), %s1237_s30, 16  ;;  %p1604_p1 = scmp.lt.s32.totalorder (!%p326_p9), %s1237_s30, %s1602_s13 }
  0x16   : > { %v1545_v0 = vld [vmem:[%s2125_s2 + $0x74] ss:$8 sps:$4 sm:$0xff]   ;;  %v1547_v1 = vld [vmem:[%s2125_s2 + $0x70] ss:$8 sps:$4 sm:$0xff]   ;;  %v1659_v2 = vmov 0   ;;  %s367_s19 = scalar_select %p366_p10, %s1774_s28, 31 }
  0x17   : > { %567 = vmatprep.mubr.bf16.mxu0 %v1659_v2  ;;  %535 = vmatprep.subr.bf16.mxu0 %v1545_v0  ;;  %v1548_v3 = vld [vmem:[%s2125_s2 + $0x64] ss:$8 sps:$4 sm:$0xff]   ;;  %v1550_v4 = vld [vmem:[%s2125_s2 + $0x60] ss:$8 sps:$4 sm:$0xff]   ;;  %v1551_v5 = vld [vmem:[%s2125_s2 + $0x54] ss:$8 sps:$4 sm:$0xff]   ;;  %p1598_p12 = scmp.ne.s32.totalorder %s1237_s30, %s1597_s12  ;;  %p1605_p2 = scmp.lt.s32.totalorder %s1603_s21, %s1597_s12 }
  0x18   : > { %536 = vmatpush1.bf16.msra.mxu0 %v1547_v1  ;;  %s1305_s26 = sshll.u32 %s367_s19, 2  ;;  %v1553_v6 = vld [vmem:[%s2125_s2 + $0x50] ss:$8 sps:$4 sm:$0xff]   ;;  %v1554_v7 = vld [vmem:[%s2125_s2 + $0x44] ss:$8 sps:$4 sm:$0xff]   ;;  %vm1661_vm0 = vmmov 0  }
  0x19   : > { %537 = vmatprep.subr.bf16.mxu0 %v1548_v3  ;;  %s1800_s14 = scalar_lea.vmem %s2123_s0, %s1305_s26  ;;  %v1556_v8 = vld [vmem:[%s2125_s2 + $0x40] ss:$8 sps:$4 sm:$0xff]   ;;  %v1557_v9 = vld [vmem:[%s2125_s2 + $0x34] ss:$8 sps:$4 sm:$0xff]   ;;  %v1559_v10 = vld [vmem:[%s2125_s2 + $0x30] ss:$8 sps:$4 sm:$0xff]   ;;  %s2088_s26 = scalar_lea.hbm %s2133_s10, %s1774_s28 }
  0x1a   : > { %v1560_v11 = vld [vmem:[%s2125_s2 + $0x24] ss:$8 sps:$4 sm:$0xff]   ;;  %v1562_v12 = vld [vmem:[%s2125_s2 + $0x20] ss:$8 sps:$4 sm:$0xff]   ;;  %v1563_v13 = vld [vmem:[%s2125_s2 + $0x14] ss:$8 sps:$4 sm:$0xff]   ;;  %p1599_p13 = pnand %p1598_p12, %p1760_p5  ;;  %p1606_p3 = por %p1605_p2, %p1604_p1 }
  0x1b   : > { %v1577_v14 = vld [vmem:[%s2127_s4 + $0x38] sm:$0xff]   ;;  %v1578_v15 = vld [vmem:[%s2127_s4 + $0x30] sm:$0xff]   ;;  %v1579_v17 = vld [vmem:[%s2127_s4 + $0x28] sm:$0xff]   ;;  %s2143_s9 = smov (!%p371_p11, %s1743_s9), 1 }
  0x1c   : > { %538 = vmatpush1.bf16.msra.mxu0 %v1550_v4  ;;  %v1565_v16 = vld [vmem:[%s2125_s2 + $0x10] ss:$8 sps:$4 sm:$0xff]   ;;  %1403 = vmatprep.subr.bf16.mxu1 %v1577_v14  ;;  %v1566_v18 = vld [vmem:[%s2125_s2 + $0x4] ss:$8 sps:$4 sm:$0xff]   ;;  %v1568_v19 = vld [vmem:[%s2125_s2] ss:$8 sps:$4 sm:$0xff]   ;;  %s373_s22 = scalar_lea.vmem %s2124_s1, %s2143_s9  ;;  %p1600_p0 = pneg %p1599_p13 }
  0x1d   : > { %539 = vmatprep.subr.bf16.mxu0 %v1551_v5  ;;  %1404 = vmatpush3.bf16.msra.mxu1 %v1577_v14  ;;  %v1569_v20 = vld [vmem:[%s1800_s14] sm:$0xff]   ;;  %v1570_v21 = vld [vmem:[%s1800_s14 + $0x8] sm:$0xff]   ;;  %v1571_v22 = vld [vmem:[%s1800_s14 + $0x10] sm:$0xff]   ;;  %s1224_s9 = scalar_lea.sflag [#allocation4], %s363_s27 }
  0x1e   : > { %1405 = vmatprep.subr.bf16.mxu1 %v1578_v15  ;;  %v1572_v23 = vld [vmem:[%s1800_s14 + $0x18] sm:$0xff]   ;;  %v1573_v24 = vld [vmem:[%s1800_s14 + $0x20] sm:$0xff]   ;;  %v1574_v25 = vld [vmem:[%s1800_s14 + $0x28] sm:$0xff]   ;;  %p1607_p4 = pnand %p1606_p3, %p1600_p0 }
  0x1f   : > { %v1575_v26 = vld [vmem:[%s1800_s14 + $0x30] sm:$0xff]   ;;  %v1576_v27 = vld [vmem:[%s1800_s14 + $0x38] sm:$0xff]   ;;  %v1580_v28 = vld [vmem:[%s2127_s4 + $0x20] sm:$0xff]   ;;  %s1087_s14 = sld [smem:[#allocation2]] }
  0x20   : > { %540 = vmatpush1.bf16.msra.mxu0 %v1553_v6  ;;  %v1581_v29 = vld [vmem:[%s2127_s4 + $0x18] sm:$0xff]   ;;  %v1582_v30 = vld [vmem:[%s2127_s4 + $0x10] sm:$0xff]   ;;  %v1583_v31 = vld [vmem:[%s2127_s4 + $0x8] sm:$0xff]  }
  0x21   : > { %541 = vmatprep.subr.bf16.mxu0 %v1554_v7  ;;  %1406 = vmatpush3.bf16.msra.mxu1 %v1578_v15  ;;  %v1584_v32 = vld [vmem:[%s2127_s4] sm:$0xff]   ;;  %v1585_v33 = vld [vmem:[%s2129_s6 + $0x38] sm:$0xff]   ;;  %v1586_v55 = vld [vmem:[%s2129_s6 + $0x30] sm:$0xff]  }
  0x22   : > { %1407 = vmatprep.subr.bf16.mxu1 %v1579_v17  ;;  %v1876_v36 = vld [vmem:[%s2126_s3] ss:$0 sm:$0xff]  ;;  %v1587_v60 = vld [vmem:[%s2129_s6 + $0x28] sm:$0xff]   ;;  %v1589_v7 = vld [vmem:[%s2129_s6 + $0x18] sm:$0xff]  }
  0x24   : > { %542 = vmatpush1.bf16.msra.mxu0 %v1556_v8 }
  0x25   : > { %543 = vmatprep.subr.bf16.mxu0 %v1557_v9  ;;  %1408 = vmatpush3.bf16.msra.mxu1 %v1579_v17 }
  0x26   : > { %1409 = vmatprep.subr.bf16.mxu1 %v1580_v28 }
  0x28   : > { %544 = vmatpush1.bf16.msra.mxu0 %v1559_v10 }
  0x29   : > { %545 = vmatprep.subr.bf16.mxu0 %v1560_v11  ;;  %1410 = vmatpush3.bf16.msra.mxu1 %v1580_v28 }
  0x2a   : > { %1411 = vmatprep.subr.bf16.mxu1 %v1581_v29 }
  0x2c   : > { %546 = vmatpush1.bf16.msra.mxu0 %v1562_v12 }
  0x2d   : > { %547 = vmatprep.subr.bf16.mxu0 %v1563_v13  ;;  %1412 = vmatpush3.bf16.msra.mxu1 %v1581_v29 }
  0x2e   : > { %1413 = vmatprep.subr.bf16.mxu1 %v1582_v30 }
  0x30   : > { %548 = vmatpush1.bf16.msra.mxu0 %v1565_v16 }
  0x31   : > { %549 = vmatprep.subr.bf16.mxu0 %v1566_v18  ;;  %1414 = vmatpush3.bf16.msra.mxu1 %v1582_v30 }
  0x32   : > { %1415 = vmatprep.subr.bf16.mxu1 %v1583_v31 }
  0x34   : > { %550 = vmatpush1.bf16.msra.mxu0 %v1568_v19 }
  0x35   : > { %1416 = vmatpush3.bf16.msra.mxu1 %v1583_v31 }
  0x36   : > { %1417 = vmatprep.subr.bf16.mxu1 %v1584_v32 }
  0x37   : > { %568 = vmatmul.mubr.bf16.vlgmr.msra.gmra.mxu0 %v1569_v20 }
  0x38   : > { %577 = vmatprep.mubr.bf16.mxu0 %v1659_v2 }
  0x39   : > { %1418 = vmatpush3.bf16.msra.mxu1 %v1584_v32 }
  0x3a   : > { %1435 = vmatprep.subr.bf16.mxu1 %v1585_v33 }
  0x3f   : > { %578 = vmatmul.mubr.bf16.gmra.mxu0 %v1570_v21 }
  0x40   : > { %587 = vmatprep.mubr.bf16.mxu0 %v1659_v2 }
  0x47   : > { %588 = vmatmul.mubr.bf16.gmra.mxu0 %v1571_v22 }
  0x48   : > { %597 = vmatprep.mubr.bf16.mxu0 %v1659_v2 }
  0x4f   : > { %598 = vmatmul.mubr.bf16.gmra.mxu0 %v1572_v23 }
  0x50   : > { %607 = vmatprep.mubr.bf16.mxu0 %v1659_v2 }
  0x57   : > { %608 = vmatmul.mubr.bf16.gmra.mxu0 %v1573_v24 }
  0x58   : > { %617 = vmatprep.mubr.bf16.mxu0 %v1659_v2 }
  0x5f   : > { %618 = vmatmul.mubr.bf16.gmra.mxu0 %v1574_v25 }
  0x60   : > { %627 = vmatprep.mubr.bf16.mxu0 %v1659_v2 }
  0x67   : > { %628 = vmatmul.mubr.bf16.gmra.mxu0 %v1575_v26 }
  0x68   : > { %637 = vmatprep.mubr.bf16.mxu0 %v1659_v2  ;;  %v1588_v2 = vld [vmem:[%s2129_s6 + $0x20] sm:$0xff]  }
  0x6f   : > { %638 = vmatmul.mubr.bf16.gmra.mxu0 %v1576_v27 }
  0xf7   : > { %v1871_v34 = vpop.f32.mrf.mxu0 }
  0xf9   : > { %v571_v35 = vpop.f32.mrf.mxu0 }
  0xfa   : > { %v655_v38 = vadd.f32 %v1876_v36, %v571_v35 }
  0xfb   : > { %v1878_v37 = vpop.f32.mrf.mxu0 }
  0xfc   : > { %v671_v42 = vmax.f32 %v655_v38, 0.0 }
  0xfd   : > { %v575_v39 = vpop.f32.mrf.mxu0 }
  0xfe   : > { %v656_v40 = vadd.f32 %v1876_v36, %v575_v39 }
  0xff   : > { %v1882_v41 = vpop.f32.mrf.mxu0 }
 0x100   : > { %v672_v43 = vmax.f32 %v656_v40, 0.0 }
 0x101   : > { %v581_v44 = vpop.f32.mrf.mxu0 }
 0x102   : > { %v687_v45 = vpack.c.bf16 %v672_v43, %v671_v42  ;;  %v657_v47 = vadd.f32 %v1876_v36, %v581_v44 }
 0x103   : > { %v1884_v46 = vpop.f32.mrf.mxu0 }
 0x104   : > { %1419 = vmatprep.mubr.bf16.mxu1 %v687_v45  ;;  %v673_v51 = vmax.f32 %v657_v47, 0.0 }
 0x105   : > { %v585_v48 = vpop.f32.mrf.mxu0 }
 0x106   : > { %v658_v49 = vadd.f32 %v1876_v36, %v585_v48 }
 0x107   : > { %v1888_v50 = vpop.f32.mrf.mxu0 }
 0x108   : > { %v674_v52 = vmax.f32 %v658_v49, 0.0 }
 0x109   : > { %v591_v53 = vpop.f32.mrf.mxu0 }
 0x10a   : > { %v688_v54 = vpack.c.bf16 %v674_v52, %v673_v51  ;;  %v659_v57 = vadd.f32 %v1876_v36, %v591_v53  ;;  %v1590_v53 = vld [vmem:[%s2129_s6 + $0x10] sm:$0xff]  }
 0x10b   : > { %v1893_v56 = vpop.f32.mrf.mxu0 }
 0x10c   : > { %1420 = vmatmul.mubr.bf16.vlgmr.msra.gmra.mxu1 %v688_v54  ;;  %v675_v62 = vmax.f32 %v659_v57, 0.0  ;;  %v1591_v54 = vld [vmem:[%s2129_s6 + $0x8] sm:$0xff]  }
 0x10d   : > { %v595_v58 = vpop.f32.mrf.mxu0  ;;  %1436 = vmatpush3.bf16.msra.mxu1 %v1585_v33 }
 0x10e   : > { %v660_v59 = vadd.f32 %v1876_v36, %v595_v58  ;;  %1437 = vmatprep.subr.bf16.mxu1 %v1586_v55  ;;  %v1331_v58 = vld [vmem:[%s2128_s5] ss:$0 sm:$0xff] }
 0x10f   : > { %v1900_v61 = vpop.f32.mrf.mxu0 }
 0x110   : > { %v676_v63 = vmax.f32 %v660_v59, 0.0 }
 0x111   : > { %v601_v0 = vpop.f32.mrf.mxu0  ;;  %1438 = vmatpush3.bf16.msra.mxu1 %v1586_v55 }
 0x112   : > { %v689_v1 = vpack.c.bf16 %v676_v63, %v675_v62  ;;  %1439 = vmatprep.subr.bf16.mxu1 %v1587_v60  ;;  %v661_v4 = vadd.f32 %v1876_v36, %v601_v0 }
 0x113   : > { %v1905_v3 = vpop.f32.mrf.mxu0 }
 0x114   : > { %1423 = vmatprep.mubr.bf16.mxu1 %v689_v1  ;;  %v677_v9 = vmax.f32 %v661_v4, 0.0 }
 0x115   : > { %v605_v5 = vpop.f32.mrf.mxu0  ;;  %1440 = vmatpush3.bf16.msra.mxu1 %v1587_v60 }
 0x116   : > { %v662_v6 = vadd.f32 %v1876_v36, %v605_v5  ;;  %1441 = vmatprep.subr.bf16.mxu1 %v1588_v2 }
 0x117   : > { %v1912_v8 = vpop.f32.mrf.mxu0 }
 0x118   : > { %v678_v10 = vmax.f32 %v662_v6, 0.0 }
 0x119   : > { %v611_v11 = vpop.f32.mrf.mxu0  ;;  %1442 = vmatpush3.bf16.msra.mxu1 %v1588_v2 }
 0x11a   : > { %v690_v12 = vpack.c.bf16 %v678_v10, %v677_v9  ;;  %1443 = vmatprep.subr.bf16.mxu1 %v1589_v7  ;;  %v663_v14 = vadd.f32 %v1876_v36, %v611_v11 }
 0x11b   : > { %v1914_v13 = vpop.f32.mrf.mxu0 }
 0x11c   : > { %1424 = vmatmul.mubr.bf16.gmra.mxu1 %v690_v12  ;;  %v679_v18 = vmax.f32 %v663_v14, 0.0 }
 0x11d   : > { %v615_v15 = vpop.f32.mrf.mxu0  ;;  %1444 = vmatpush3.bf16.msra.mxu1 %v1589_v7 }
 0x11e   : > { %v664_v16 = vadd.f32 %v1876_v36, %v615_v15  ;;  %1445 = vmatprep.subr.bf16.mxu1 %v1590_v53 }
 0x11f   : > { %v1918_v17 = vpop.f32.mrf.mxu0 }
 0x120   : > { %v680_v19 = vmax.f32 %v664_v16, 0.0 }
 0x121   : > { %v621_v20 = vpop.f32.mrf.mxu0  ;;  %1446 = vmatpush3.bf16.msra.mxu1 %v1590_v53 }
 0x122   : > { %v691_v21 = vpack.c.bf16 %v680_v19, %v679_v18  ;;  %v665_v23 = vadd.f32 %v1876_v36, %v621_v20  ;;  %1447 = vmatprep.subr.bf16.mxu1 %v1591_v54 }
 0x123   : > { %v1920_v22 = vpop.f32.mrf.mxu0 }
 0x124   : > { %1427 = vmatprep.mubr.bf16.mxu1 %v691_v21  ;;  %v681_v27 = vmax.f32 %v665_v23, 0.0 }
 0x125   : > { %v625_v24 = vpop.f32.mrf.mxu0  ;;  %1448 = vmatpush3.bf16.msra.mxu1 %v1591_v54 }
 0x126   : > { %v666_v25 = vadd.f32 %v1876_v36, %v625_v24 }
 0x127   : > { %v1924_v26 = vpop.f32.mrf.mxu0 }
 0x128   : > { %v682_v28 = vmax.f32 %v666_v25, 0.0 }
 0x129   : > { %v631_v29 = vpop.f32.mrf.mxu0 }
 0x12a   : > { %v692_v30 = vpack.c.bf16 %v682_v28, %v681_v27  ;;  %v667_v32 = vadd.f32 %v1876_v36, %v631_v29 }
 0x12b   : > { %v1926_v31 = vpop.f32.mrf.mxu0 }
 0x12c   : > { %1428 = vmatmul.mubr.bf16.gmra.mxu1 %v692_v30  ;;  %v683_v39 = vmax.f32 %v667_v32, 0.0 }
 0x12d   : > { %v635_v33 = vpop.f32.mrf.mxu0 }
 0x12e   : > { %v668_v35 = vadd.f32 %v1876_v36, %v635_v33 }
 0x12f   : > { %v1930_v38 = vpop.f32.mrf.mxu0 }
 0x130   : > { %v684_v40 = vmax.f32 %v668_v35, 0.0 }
 0x131   : > { %v641_v42 = vpop.f32.mrf.mxu0 }
 0x132   : > { %v693_v43 = vpack.c.bf16 %v684_v40, %v683_v39  ;;  %v669_v45 = vadd.f32 %v1876_v36, %v641_v42 }
 0x133   : > { %v1932_v44 = vpop.f32.mrf.mxu0 }
 0x134   : > { %1431 = vmatprep.mubr.bf16.mxu1 %v693_v43  ;;  %v685_v49 = vmax.f32 %v669_v45, 0.0 }
 0x135   : > { %v645_v47 = vpop.f32.mrf.mxu0 }
 0x136   : > { %v670_v48 = vadd.f32 %v1876_v36, %v645_v47  ;;  %v1592_v36 = vld [vmem:[%s2129_s6] sm:$0xff]  }
 0x137   : > { %1449 = vmatprep.subr.bf16.mxu1 %v1592_v36 }
 0x138   : > { %v686_v51 = vmax.f32 %v670_v48, 0.0  ;;  %1450 = vmatpush3.bf16.msra.mxu1 %v1592_v36 }
 0x13a   : > { %v694_v52 = vpack.c.bf16 %v686_v51, %v685_v49 }
 0x13c   : > { %1432 = vmatmul.mubr.bf16.gmra.mxu1 %v694_v52 }
 0x1cc   : > { %v1421_v55 = vpop.f32.mrf.mxu1 }
 0x1cd   : > { %v809_v63 = vadd.f32 %v1421_v55, %v1331_v58 }
 0x1ce   : > { %v800_v57 = vpop.f32.mrf.mxu1 }
 0x1cf   : > { %v801_v60 = vadd.f32 %v1331_v58, %v800_v57  ;;  %v865_v6 = vmax.f32 %v809_v63, 0.0 }
 0x1d0   : > { %v1422_v59 = vpop.f32.mrf.mxu1 }
 0x1d1   : > { %v812_v62 = vadd.f32 %v1422_v59, %v1331_v58  ;;  %v863_v4 = vmax.f32 %v801_v60, 0.0 }
 0x1d2   : > { %v803_v0 = vpop.f32.mrf.mxu1 }
 0x1d3   : > { %v804_v1 = vadd.f32 %v1331_v58, %v803_v0  ;;  %v866_v2 = vmax.f32 %v812_v62, 0.0 }
 0x1d5   : > { %v864_v5 = vmax.f32 %v804_v1, 0.0  ;;  %v880_v9 = vpack.c.bf16 %v866_v2, %v865_v6 }
 0x1d7   : > { %v879_v7 = vpack.c.bf16 %v864_v5, %v863_v4  ;;  %v1660_v4 = vmov 0.0   ;;  %v1953_v5 = vld [vmem:[%s2130_s7] ss:$0 sm:$0xff] }
 0x1d8   : > { %1467 = vmatprep.subr.mxu0 %v1660_v4  ;;  %1499 = vmatprep.mubr.msk.f32.mxu0 %vm1661_vm0, %v1660_v4 }
 0x1d9   : > { %1451 = vmatprep.mubr.bf16.mxu1 %v879_v7 }
 0x1da   : > { %1452 = vmatmul.mubr.bf16.vlgmr.msra.gmra.mxu1 %v880_v9  ;;  %v1071_v9 = vmul.f32 %v1871_v34, %v1871_v34 }
 0x1dc   : > { %v1425_v10 = vpop.f32.mrf.mxu1 }
 0x1dd   : > { %v825_v16 = vadd.f32 %v1425_v10, %v1331_v58  ;;  %v1963_v10 = vld [vmem:[%s2131_s8] ss:$0 sm:$0xff] }
 0x1de   : > { %v816_v11 = vpop.f32.mrf.mxu1 }
 0x1df   : > { %v817_v14 = vadd.f32 %v1331_v58, %v816_v11  ;;  %v869_v24 = vmax.f32 %v825_v16, 0.0 }
 0x1e0   : > { %v1426_v12 = vpop.f32.mrf.mxu1 }
 0x1e1   : > { %v828_v15 = vadd.f32 %v1426_v12, %v1331_v58  ;;  %v867_v21 = vmax.f32 %v817_v14, 0.0  ;;  %v1965_v12 = vstv %s1087_s14 }
 0x1e2   : > { %v819_v18 = vpop.f32.mrf.mxu1 }
 0x1e3   : > { %v820_v19 = vadd.f32 %v1331_v58, %v819_v18  ;;  %v870_v20 = vmax.f32 %v828_v15, 0.0  ;;  %v1074_v18 = vmul.f32 %v1884_v46, %v1884_v46 }
 0x1e5   : > { %v868_v23 = vmax.f32 %v820_v19, 0.0  ;;  %v882_v27 = vpack.c.bf16 %v870_v20, %v869_v24  ;;  %v1092_v46 = vmul.f32 %v1965_v12, %v1074_v18  ;;  %v1083_v18 = vmul.f32 %v1924_v26, %v1924_v26 }
 0x1e7   : > { %v881_v25 = vpack.c.bf16 %v868_v23, %v867_v21  ;;  %v1089_v21 = vmul.f32 %v1965_v12, %v1071_v9  ;;  %v1072_v23 = vmul.f32 %v1878_v37, %v1878_v37 }
 0x1e9   : > { %1455 = vmatprep.mubr.bf16.mxu1 %v881_v25 }
 0x1ea   : > { %1456 = vmatmul.mubr.bf16.gmra.mxu1 %v882_v27 }
 0x1ec   : > { %v1429_v28 = vpop.f32.mrf.mxu1 }
 0x1ed   : > { %v841_v35 = vadd.f32 %v1429_v28, %v1331_v58 }
 0x1ee   : > { %v832_v29 = vpop.f32.mrf.mxu1 }
 0x1ef   : > { %v833_v32 = vadd.f32 %v1331_v58, %v832_v29  ;;  %v873_v47 = vmax.f32 %v841_v35, 0.0  ;;  %v1090_v35 = vmul.f32 %v1965_v12, %v1072_v23  ;;  %v1082_v23 = vmul.f32 %v1920_v22, %v1920_v22 }
 0x1f0   : > { %v1430_v30 = vpop.f32.mrf.mxu1 }
 0x1f1   : > { %v844_v33 = vadd.f32 %v1430_v30, %v1331_v58  ;;  %v871_v43 = vmax.f32 %v833_v32, 0.0 }
 0x1f2   : > { %v835_v39 = vpop.f32.mrf.mxu1 }
 0x1f3   : > { %v836_v40 = vadd.f32 %v1331_v58, %v835_v39  ;;  %v874_v42 = vmax.f32 %v844_v33, 0.0 }
 0x1f5   : > { %v872_v45 = vmax.f32 %v836_v40, 0.0  ;;  %v884_v49 = vpack.c.bf16 %v874_v42, %v873_v47 }
 0x1f7   : > { %v883_v48 = vpack.c.bf16 %v872_v45, %v871_v43 }
 0x1f9   : > { %1459 = vmatprep.mubr.bf16.mxu1 %v883_v48 }
 0x1fa   : > { %1460 = vmatmul.mubr.bf16.gmra.mxu1 %v884_v49 }
 0x1fc   : > { %v1433_v51 = vpop.f32.mrf.mxu1 }
 0x1fd   : > { %v857_v55 = vadd.f32 %v1433_v51, %v1331_v58 }
 0x1fe   : > { %v848_v52 = vpop.f32.mrf.mxu1 }
 0x1ff   : > { %v849_v54 = vadd.f32 %v1331_v58, %v848_v52  ;;  %v877_v0 = vmax.f32 %v857_v55, 0.0 }
 0x200   : > { %v1434_v53 = vpop.f32.mrf.mxu1 }
 0x201   : > { %v860_v36 = vadd.f32 %v1434_v53, %v1331_v58  ;;  %v875_v62 = vmax.f32 %v849_v54, 0.0 }
 0x202   : > { %v851_v57 = vpop.f32.mrf.mxu1 }
 0x203   : > { %v852_v59 = vadd.f32 %v1331_v58, %v851_v57  ;;  %v878_v60 = vmax.f32 %v860_v36, 0.0  ;;  %v1073_v58 = vmul.f32 %v1882_v41, %v1882_v41  ;;  %v1086_v57 = vmul.f32 %v1932_v44, %v1932_v44 }
 0x205   : > { %v876_v63 = vmax.f32 %v852_v59, 0.0  ;;  %v886_v2 = vpack.c.bf16 %v878_v60, %v877_v0  ;;  %v1091_v16 = vmul.f32 %v1965_v12, %v1073_v58 }
 0x207   : > { %v885_v1 = vpack.c.bf16 %v876_v63, %v875_v62 }
 0x209   : > { %1463 = vmatprep.mubr.bf16.mxu1 %v885_v1  ;;  %v1085_v1 = vmul.f32 %v1930_v38, %v1930_v38 }
 0x20a   : > { %1464 = vmatmul.mubr.bf16.gmra.mxu1 %v886_v2  ;;  %v1104_v2 = vmul.f32 %v1965_v12, %v1086_v57 }
 0x29a   : > { %v1453_v6 = vpop.f32.mrf.mxu1 }
 0x29b   : > { %v1001_v7 = vadd.f32 %v1453_v6, %v1953_v5 }
 0x29c   : > { %v992_v11 = vpop.f32.mrf.mxu1 }
 0x29d   : > { %v1057_v14 = vmax.f32 %v1001_v7, 0.0  ;;  %v993_v15 = vadd.f32 %v1953_v5, %v992_v11  ;;  %v1084_v11 = vmul.f32 %v1926_v31, %v1926_v31 }
 0x29e   : > { %v1454_v41 = vpop.f32.mrf.mxu1 }
 0x29f   : > { %v1114_v19 = vmul.f32 %v1963_v10, %v1057_v14  ;;  %v1055_v34 = vmax.f32 %v993_v15, 0.0  ;;  %v1004_v20 = vadd.f32 %v1454_v41, %v1953_v5  ;;  %v1103_v14 = vmul.f32 %v1965_v12, %v1085_v1 }
 0x2a0   : > { %v995_v24 = vpop.f32.mrf.mxu1 }
 0x2a1   : > { %v1976_v25 = vadd.f32 %v1114_v19, %v1091_v16  ;;  %v1112_v27 = vmul.f32 %v1963_v10, %v1055_v34  ;;  %v1058_v28 = vmax.f32 %v1004_v20, 0.0  ;;  %v996_v29 = vadd.f32 %v1953_v5, %v995_v24 }
 0x2a2   : > { %v1102_v19 = vmul.f32 %v1965_v12, %v1084_v11  ;;  %v1101_v24 = vmul.f32 %v1965_v12, %v1083_v18  ;;  %v1075_v11 = vmul.f32 %v1888_v50, %v1888_v50  ;;  %v1662_v50 = vmov 1.0  }
 0x2a3   : > { %v1981_v30 = vadd.f32 %v1112_v27, %v1089_v21  ;;  %v1115_v32 = vmul.f32 %v1963_v10, %v1058_v28  ;;  %v1056_v33 = vmax.f32 %v996_v29, 0.0 }
 0x2a5   : > { %v1985_v39 = vadd.f32 %v1115_v32, %v1092_v46  ;;  %v1113_v37 = vmul.f32 %v1963_v10, %v1056_v33  ;;  %v1081_v46 = vmul.f32 %v1918_v17, %v1918_v17  ;;  %v1100_v32 = vmul.f32 %v1965_v12, %v1082_v23 }
 0x2a7   : > { %v1988_v40 = vadd.f32 %v1113_v37, %v1090_v35 }
 0x2aa   : > { %v1990_v42 = vpop.f32.mrf.mxu1 }
 0x2ac   : > { %v1992_v43 = vpop.f32.mrf.mxu1 }
 0x2ae   : > { %v1458_v45 = vpop.f32.mrf.mxu1 }
 0x2af   : > { %v1020_v17 = vadd.f32 %v1458_v45, %v1953_v5  ;;  %v1078_v45 = vmul.f32 %v1905_v3, %v1905_v3 }
 0x2b0   : > { %v1994_v47 = vpop.f32.mrf.mxu1 }
 0x2b1   : > { %v1096_v1 = vmul.f32 %v1965_v12, %v1078_v45 }
 0x2ba   : > { %v1461_v48 = vpop.f32.mrf.mxu1 }
 0x2bb   : > { %v1033_v31 = vadd.f32 %v1461_v48, %v1953_v5  ;;  %v1080_v48 = vmul.f32 %v1914_v13, %v1914_v13  ;;  %v1017_v13 = vadd.f32 %v1990_v42, %v1953_v5  ;;  %v1077_v42 = vmul.f32 %v1900_v61, %v1900_v61 }
 0x2bc   : > { %v1024_v49 = vpop.f32.mrf.mxu1 }
 0x2bd   : > { %v1065_v26 = vmax.f32 %v1033_v31, 0.0  ;;  %v1025_v33 = vadd.f32 %v1953_v5, %v1024_v49  ;;  %v1098_v49 = vmul.f32 %v1965_v12, %v1080_v48 }
 0x2be   : > { %v1462_v51 = vpop.f32.mrf.mxu1 }
 0x2bf   : > { %v1036_v38 = vadd.f32 %v1462_v51, %v1953_v5  ;;  %v1122_v22 = vmul.f32 %v1963_v10, %v1065_v26  ;;  %v1099_v51 = vmul.f32 %v1965_v12, %v1081_v46 }
 0x2c0   : > { %v1027_v52 = vpop.f32.mrf.mxu1 }
 0x2c1   : > { %v1066_v34 = vmax.f32 %v1036_v38, 0.0  ;;  %v1028_v28 = vadd.f32 %v1953_v5, %v1027_v52  ;;  %v1138_v52 = vadd.f32 %v1122_v22, %v1099_v51 }
 0x2c3   : > { %v1123_v27 = vmul.f32 %v1963_v10, %v1066_v34  ;;  %v1064_v37 = vmax.f32 %v1028_v28, 0.0 }
 0x2c5   : > { %v1139_v35 = vadd.f32 %v1123_v27, %v1100_v32 }
 0x2ca   : > { %v1465_v53 = vpop.f32.mrf.mxu1 }
 0x2cb   : > { %v1049_v36 = vadd.f32 %v1465_v53, %v1953_v5  ;;  %v1063_v53 = vmax.f32 %v1025_v33, 0.0 }
 0x2cc   : > { %v1040_v54 = vpop.f32.mrf.mxu1 }
 0x2cd   : > { %v1069_v62 = vmax.f32 %v1049_v36, 0.0  ;;  %v1041_v7 = vadd.f32 %v1953_v5, %v1040_v54  ;;  %v1121_v54 = vmul.f32 %v1963_v10, %v1064_v37  ;;  %v1079_v36 = vmul.f32 %v1912_v8, %v1912_v8 }
 0x2ce   : > { %v1466_v55 = vpop.f32.mrf.mxu1  ;;  %v1120_v57 = vmul.f32 %v1963_v10, %v1063_v53  ;;  %v1061_v8 = vmax.f32 %v1017_v13, 0.0 }
 0x2cf   : > { %v1052_v59 = vadd.f32 %v1466_v55, %v1953_v5  ;;  %v1126_v6 = vmul.f32 %v1963_v10, %v1069_v62  ;;  %v1067_v16 = vmax.f32 %v1041_v7, 0.0  ;;  %v1062_v55 = vmax.f32 %v1020_v17, 0.0 }
 0x2d0   : > { %v1043_v60 = vpop.f32.mrf.mxu1  ;;  %v1118_v3 = vmul.f32 %v1963_v10, %v1061_v8  ;;  %v1076_v7 = vmul.f32 %v1893_v56, %v1893_v56 }
 0x2d1   : > { %v1070_v63 = vmax.f32 %v1052_v59, 0.0  ;;  %v1044_v0 = vadd.f32 %v1953_v5, %v1043_v60  ;;  %v1142_v15 = vadd.f32 %v1126_v6, %v1103_v14  ;;  %v1124_v20 = vmul.f32 %v1963_v10, %v1067_v16 }
 0x2d2   : > { %v1137_v59 = vadd.f32 %v1121_v54, %v1098_v49  ;;  %v1097_v60 = vmul.f32 %v1965_v12, %v1079_v36  ;;  %v1119_v62 = vmul.f32 %v1963_v10, %v1062_v55  ;;  %v1094_v14 = vmul.f32 %v1965_v12, %v1076_v7 }
 0x2d3   : > { %v1127_v58 = vmul.f32 %v1963_v10, %v1070_v63  ;;  %v1068_v44 = vmax.f32 %v1044_v0, 0.0  ;;  %v1140_v29 = vadd.f32 %v1124_v20, %v1101_v24  ;;  %v1012_v63 = vadd.f32 %v1953_v5, %v1994_v47 }
 0x2d4   : > { %v1136_v0 = vadd.f32 %v1120_v57, %v1097_v60  ;;  %v1095_v47 = vmul.f32 %v1965_v12, %v1077_v42 }
 0x2d5   : > { %v1143_v9 = vadd.f32 %v1127_v58, %v1104_v2  ;;  %v1125_v41 = vmul.f32 %v1963_v10, %v1068_v44  ;;  %v1009_v2 = vadd.f32 %v1953_v5, %v1992_v43  ;;  %v1135_v58 = vadd.f32 %v1119_v62, %v1096_v1 }
 0x2d6   : > { %v1060_v6 = vmax.f32 %v1012_v63, 0.0  ;;  %v1134_v61 = vadd.f32 %v1118_v3, %v1095_v47  ;;  %v1093_v43 = vmul.f32 %v1965_v12, %v1075_v11 }
 0x2d7   : > { %1468 = vmatpush3.xpose.msra.mxu0 %v1143_v9  ;;  %v1141_v21 = vadd.f32 %v1125_v41, %v1102_v19  ;;  %v1059_v9 = vmax.f32 %v1009_v2, 0.0 }
 0x2d8   : > { %1469 = vmatprep.subr.mxu0 %v1660_v4  ;;  %v1117_v44 = vmul.f32 %v1963_v10, %v1060_v6 }
 0x2d9   : > { %v1116_v5 = vmul.f32 %v1963_v10, %v1059_v9  ;;  %v1214_v10 = vld [vmem:[%s373_s22] sm:$0x1] }
 0x2da   : > { %v1133_v56 = vadd.f32 %v1117_v44, %v1094_v14 }
 0x2db   : > { %1470 = vmatpush3.xpose.msra.mxu0 %v1142_v15  ;;  %v1132_v38 = vadd.f32 %v1116_v5, %v1093_v43 }
 0x2dc   : > { %1471 = vmatprep.subr.mxu0 %v1660_v4 }
 0x2df   : > { %1472 = vmatpush3.xpose.msra.mxu0 %v1141_v21 }
 0x2e0   : > { %1473 = vmatprep.subr.mxu0 %v1660_v4 }
 0x2e3   : > { %1474 = vmatpush3.xpose.msra.mxu0 %v1140_v29 }
 0x2e4   : > { %1475 = vmatprep.subr.mxu0 %v1660_v4 }
 0x2e7   : > { %1476 = vmatpush3.xpose.msra.mxu0 %v1139_v35 }
 0x2e8   : > { %1477 = vmatprep.subr.mxu0 %v1660_v4 }
 0x2eb   : > { %1478 = vmatpush3.xpose.msra.mxu0 %v1138_v52 }
 0x2ec   : > { %1479 = vmatprep.subr.mxu0 %v1660_v4 }
 0x2ef   : > { %1480 = vmatpush3.xpose.msra.mxu0 %v1137_v59 }
 0x2f0   : > { %1481 = vmatprep.subr.mxu0 %v1660_v4 }
 0x2f3   : > { %1482 = vmatpush3.xpose.msra.mxu0 %v1136_v0 }
 0x2f4   : > { %1483 = vmatprep.subr.mxu0 %v1660_v4 }
 0x2f7   : > { %1484 = vmatpush3.xpose.msra.mxu0 %v1135_v58 }
 0x2f8   : > { %1485 = vmatprep.subr.mxu0 %v1660_v4 }
 0x2fb   : > { %1486 = vmatpush3.xpose.msra.mxu0 %v1134_v61 }
 0x2fc   : > { %1487 = vmatprep.subr.mxu0 %v1660_v4 }
 0x2ff   : > { %1488 = vmatpush3.xpose.msra.mxu0 %v1133_v56 }
 0x300   : > { %1489 = vmatprep.subr.mxu0 %v1660_v4 }
 0x303   : > { %1490 = vmatpush3.xpose.msra.mxu0 %v1132_v38 }
 0x304   : > { %1491 = vmatprep.subr.mxu0 %v1660_v4 }
 0x307   : > { %1492 = vmatpush3.xpose.msra.mxu0 %v1985_v39 }
 0x308   : > { %1493 = vmatprep.subr.mxu0 %v1660_v4 }
 0x30b   : > { %1494 = vmatpush3.xpose.msra.mxu0 %v1976_v25 }
 0x30c   : > { %1495 = vmatprep.subr.mxu0 %v1660_v4 }
 0x30f   : > { %1496 = vmatpush3.xpose.msra.mxu0 %v1988_v40 }
 0x310   : > { %1497 = vmatprep.subr.mxu0 %v1660_v4 }
 0x313   : > { %1498 = vmatpush3.xpose.msra.mxu0 %v1981_v30 }
 0x316   : > { %1500 = vmatmul.mubr.f32.vlgmr.msra.gmra.mxu0 %v1662_v50 }
 0x3d6   : > { %v1210_v12 = vpop.f32.mrf.mxu0 }
 0x3d7   : > { %v1215_v25 = vadd.f32 %v1214_v10, %v1210_v12 }
 0x3d8   : > { %v1501_v39 = vpop.f32.mrf.mxu0 }
 0x3d9   : > { %v1350_v40 = vmul.f32 -1.442695, %v1215_v25 }
 0x3db   : > { %1593 = vpow2.f32 %v1350_v40 }
 0x3e8   : > { %v1594_v4 = vpop.eup %1593 }
 0x3e9   : > { %v1219_v15 = vadd.f32 1.0, %v1594_v4 }
 0x3eb   : > { %1595 = vrcp.f32 %v1219_v15 }
 0x3f8   : > { %v1596_v30 = vpop.eup %1595 }
 0x3f9   : > { %1222 = vst [vmem:[%s364_s29] sm:$0x1] %v1596_v30 }
 0x3fa   : > { %1610 = shalt.err (!%p1607_p4)
}
 0x3fb   : > { %s1611_s28 = scalar_lea.hbm %s2088_s26, 16  ;;  %s1615_s27 = scalar_lea.hbm %s2133_s10, 32 }
 0x3fc   : > { %p1612_p7 = scmp.ne.s32.totalorder %s2088_s26, %s1611_s28  ;;  %p1616_p10 = scmp.lt.s32.totalorder %s2088_s26, %s2133_s10 }
 0x3fd   : > { %p1617_p11 = scmp.lt.s32.totalorder %s1615_s27, %s1611_s28 }
 0x3fe   : > { %p1613_p8 = pnand %p1612_p7, %p1760_p5 }
 0x3ff   : > { %p1618_p12 = por %p1617_p11, %p1616_p10 }
 0x400   : > { %p1614_p9 = pneg %p1613_p8 }
 0x402   : > { %p1619_p13 = pnand %p1618_p12, %p1614_p9 }
 0x404   : > { %1622 = shalt.err (!%p1619_p13)
}
 0x405   : > { %1502 = dma.vmem_to_hbm [thread:$0]  (%p1760_p5), %s1237_s30, 16, %s2088_s26, %s1224_s9  }
 0x406 PF: > { %p1508_p0 = scmp.ge.s32.totalorder %s1657_s18, 2  ;;  %s1248_s14 = sand.u32 1, %s1645_s15  }
 0x407   : > { %s1249_s12 = scalar_lea.sflag [#allocation4], %s1248_s14 }
 0x408   : > { %p1505_p1 = pnand %p1508_p0, %p1764_p6 }
 0x40a   : > { %p1506_p2 = pneg %p1505_p1 }
 0x40c   : > { %1640 = dma.done.wait (%p1506_p2), %s1249_s12, 16  }
 0x40d   : > { %1642 = vsyncadd (%p1506_p2), %s1249_s12, 4294967280  ;;  %s2137_s23 = sld [smem:[#allocation6_spill]]  ;;  %p21_p3 = scmp.ge.s32.totalorder %s1747_s20, 4  }
 0x40e   : > { %s2138_s15 = smov %s1649_s16  ;;  %s2139_s16 = smov %s1653_s17 }
 0x40f   : > { %s2141_s18 = smov %s1747_s20  ;;  %23 = sbr.rel (!%p21_p3) target bundleno = 5 (0x5), region = 98 }
 0x413   : > { %s2140_s17 = smov %s2137_s23 }
 0x414   :  { %1253 = vsyncpa [#allocation4], 1 }
 0x415   :  { %1255 = vsyncpa [#allocation4 + $0x1], 1 }

</bundles_post_ra>
